<compile_context>
chip_gen: v7x
topology: tpu7x:2x2x1
jax: 0.10.0
libtpu: 0.0.40
codegen_flags: <defaults>
</compile_context>

<pallas_src>
import functools

import jax
import jax.numpy as jnp
import numpy as np
from jax.experimental import pallas as pl
from jax.experimental.pallas import tpu as pltpu


def _round_up(x, m):
    return -(-x // m) * m


def _pointer_kernel(query_ref, bias_ref, target_ref, mask_ref, a_ref, bv_ref,
                    out_ref, *, C):
    """One batch tile.

    query_ref : (Bt, E)      bias_ref : (Bt, 1)
    target_ref: (Bt, E, S)   mask_ref : (Bt, S)   (int32, 1 == masked)
    a_ref     : (E, E)       bv_ref   : (1, E)
    out_ref   : (Bt, S)
    """
    # Folded query projection: v[b] = query[b] @ A + b_v          (Bt, E)   [MXU]
    v = jnp.dot(query_ref[...], a_ref[...],
                preferred_element_type=jnp.float32) + bv_ref[...]

    # scores[b, s] = sum_e target[b, e, s] * v[b, e] + bias[b]
    # target is laid out (Bt, E, S): S sits on the 128-wide lane axis, so this is a
    # VPU multiply plus a sublane-axis reduce over E (no XLU lane reductions).
    scores = jnp.sum(target_ref[...] * v[:, :, None], axis=1) + bias_ref[...]

    logits = C * jnp.tanh(scores)
    # Large finite negative instead of -inf: fully-masked / padded rows give a
    # finite uniform softmax instead of NaN; identical when >=1 position is live.
    logits = jnp.where(mask_ref[...] == 1, -1e30, logits)

    m = jnp.max(logits, axis=-1, keepdims=True)
    e = jnp.exp(logits - m)
    denom = jnp.sum(e, axis=-1, keepdims=True)
    # Exact per-row reciprocal (one divide per row): rows sum to 1 at f32 precision.
    out_ref[...] = e * (1.0 / denom)


def _pick_tiles(B, S_pad, E):
    """Derive the batch-tile size and VMEM limit from the chip's VMEM capacity."""
    vmem_cap = 64 * 1024 * 1024  # conservative default = v7x physical VMEM per TC
    try:
        info = pltpu.get_tpu_info()
        vmem_cap = int(getattr(info, "vmem_capacity_bytes", vmem_cap))
    except Exception:
        pass
    budget = vmem_cap // 2                                  # pipeline working-set target
    vmem_limit = min((vmem_cap * 3) // 4, vmem_cap - (8 << 20))

    # Per batch row / pipeline generation: double-buffered target input plus ~1 tile
    # of multiply temporary, double-buffered mask & out, tiny query/bias.
    per_row = 3 * (E * S_pad * 4) + 2 * 2 * (S_pad * 4) + 2 * (E + 1) * 4
    fixed = 2 * (E * E + E) * 4                             # folded weights (shared)
    bt = max(8, ((budget - fixed) // per_row // 8) * 8)

    B8 = _round_up(B, 8)
    bt = min(bt, B8)
    if B8 >= 16:
        # Guarantee >= 2 batch tiles so the "parallel" grid axis shards across both
        # TensorCores on v7x (costs nothing on single-TC v5e/v6e).
        bt = min(bt, _round_up(-(-B8 // 2), 8))
    n_tiles = -(-B8 // bt)
    B_pad = n_tiles * bt
    return bt, n_tiles, B_pad, int(vmem_limit)


def pointer_pallas(query, target, mask, wq, bq, wk, bk, C):
    """Pointer forward.

    query (B, E), target (B, S, E), mask (B, S) int (1 == masked).
    wq, wk: (H, E) PyTorch nn.Linear weights; bq, bk: (H,) biases.
    Returns alpha (B, S) float32.
    """
    query = query.astype(jnp.float32)
    target = target.astype(jnp.float32)
    wq = wq.astype(jnp.float32); wk = wk.astype(jnp.float32)
    bq = bq.astype(jnp.float32); bk = bk.astype(jnp.float32)

    B, E = query.shape
    _, S, _ = target.shape

    # ---- algebraic fold of both Linear layers (tiny E x E precompute) ----
    A = wq.T @ wk                         # (E, E) : sum_h Wq[h,e] Wk[h,e']
    b_v = (bq @ wk)[None, :]              # (1, E) : sum_h bq[h]  Wk[h,e']
    w_b = wq.T @ bk                       # (E,)   : sum_h Wq[h,e] bk[h]
    c0 = jnp.dot(bq, bk)                  # scalar : bq . bk
    bias = (query @ w_b + c0)[:, None]    # (B, 1) per-row constant (query-side fold)

    # ---- lane-dense layout: target (B, E, S_pad); S padded to a multiple of 128 ----
    # NOTE: in a real model the producer should emit target in (B, E, S) layout (the
    # transpose fuses upstream); the kernel contract is what matters for perf.
    target_t = jnp.swapaxes(target, 1, 2)                    # (B, E, S)
    S_pad = _round_up(S, 128)
    bt, n_tiles, B_pad, vmem_limit = _pick_tiles(B, S_pad, E)

    pad_b, pad_s = B_pad - B, S_pad - S
    query_p = jnp.pad(query, ((0, pad_b), (0, 0)))
    bias_p = jnp.pad(bias, ((0, pad_b), (0, 0)))
    target_p = jnp.pad(target_t, ((0, pad_b), (0, 0), (0, pad_s)))
    mask_p = jnp.pad(mask.astype(jnp.int32), ((0, pad_b), (0, pad_s)),
                     constant_values=1)                      # padded positions masked

    kernel = functools.partial(_pointer_kernel, C=float(C))

    # TODO(synk): for very long S, add an S grid axis ("arbitrary", innermost) with an
    # online-softmax epilogue so bt stays large independent of S*E.
    out = pl.pallas_call(
        kernel,
        out_shape=jax.ShapeDtypeStruct((B_pad, S_pad), jnp.float32),
        grid_spec=pltpu.PrefetchScalarGridSpec(
            num_scalar_prefetch=0,
            grid=(n_tiles,),
            in_specs=[
                pl.BlockSpec((bt, E), lambda b: (b, 0)),            # query tile
                pl.BlockSpec((bt, 1), lambda b: (b, 0)),            # per-row bias
                pl.BlockSpec((bt, E, S_pad), lambda b: (b, 0, 0)),  # target tile (lane-dense S)
                pl.BlockSpec((bt, S_pad), lambda b: (b, 0)),        # mask tile
                pl.BlockSpec((E, E), lambda b: (0, 0)),             # folded weight A (shared)
                pl.BlockSpec((1, E), lambda b: (0, 0)),             # folded bias b_v (shared)
            ],
            out_specs=pl.BlockSpec((bt, S_pad), lambda b: (b, 0)),
        ),
        compiler_params=pltpu.CompilerParams(
            dimension_semantics=("parallel",),
            vmem_limit_bytes=vmem_limit),
    )(query_p, bias_p, target_p, mask_p, A, b_v)

    return out[:B, :S]


def pointer_reference(query, target, mask, wq, bq, wk, bk, C):
    q = query @ wq.T + bq                              # (B, H)
    k = jnp.einsum('bse,he->bsh', target, wk) + bk     # (B, S, H)
    qk = jnp.einsum('bh,bsh->bs', q, k)
    qk = C * jnp.tanh(qk)
    qk = jnp.where(mask == 1, -jnp.inf, qk)
    return jax.nn.softmax(qk, axis=-1)


if __name__ == "__main__":
    B, S, E, H = 2, 8, 32, 32
    C = 10.0

    key = jax.random.PRNGKey(0)
    k_q, k_t, k_m, k_wq, k_bq, k_wk, k_bk = jax.random.split(key, 7)

    query = jax.random.normal(k_q, (B, E), dtype=jnp.float32)
    target = jax.random.normal(k_t, (B, S, E), dtype=jnp.float32)

    # mask: 1 == masked-out position; guarantee at least one unmasked per row
    mask = (jax.random.uniform(k_m, (B, S)) > 0.7).astype(jnp.int32)
    mask = mask.at[:, 0].set(0)

    # PyTorch nn.Linear default init: U(-1/sqrt(in), 1/sqrt(in)); weight [H, E]
    bound = 1.0 / np.sqrt(E)
    wq = jax.random.uniform(k_wq, (H, E), minval=-bound, maxval=bound, dtype=jnp.float32)
    bq = jax.random.uniform(k_bq, (H,), minval=-bound, maxval=bound, dtype=jnp.float32)
    wk = jax.random.uniform(k_wk, (H, E), minval=-bound, maxval=bound, dtype=jnp.float32)
    bk = jax.random.uniform(k_bk, (H,), minval=-bound, maxval=bound, dtype=jnp.float32)

    alpha = pointer_pallas(query, target, mask, wq, bq, wk, bk, C)
    alpha = jax.block_until_ready(alpha)

    alpha_ref = pointer_reference(query, target, mask, wq, bq, wk, bk, C)
    np.testing.assert_allclose(np.asarray(alpha), np.asarray(alpha_ref),
                               rtol=1e-3, atol=1e-3)
    # rows sum to 1 (exact per-row divide in the kernel)
    np.testing.assert_allclose(np.asarray(alpha).sum(-1), np.ones(B),
                               rtol=0, atol=1e-5)

    print("KERNEL_OK")
</pallas_src>

<mosaic_0001>
module attributes {stable_mosaic.version = 11 : i64} {
  func.func @_pointer_kernel(%arg0: i32, %arg1: memref<8x32xf32, #tpu.memory_space<vmem>>, %arg2: memref<8x1xf32, #tpu.memory_space<vmem>>, %arg3: memref<8x32x128xf32, #tpu.memory_space<vmem>>, %arg4: memref<8x128xi32, #tpu.memory_space<vmem>>, %arg5: memref<32x32xf32, #tpu.memory_space<vmem>>, %arg6: memref<1x32xf32, #tpu.memory_space<vmem>>, %arg7: memref<8x128xf32, #tpu.memory_space<vmem>>) attributes {dimension_semantics = [#tpu.dimension_semantics<parallel>], iteration_bounds = array<i64: 1>, scalar_prefetch = 0 : i64, scratch_operands = 0 : i64, tpu.core_type = #tpu.core_type<tc>, window_params = [{transform_indices = @transform_0, window_bounds = array<i64: 8, 32>}, {transform_indices = @transform_1, window_bounds = array<i64: 8, 1>}, {transform_indices = @transform_2, window_bounds = array<i64: 8, 32, 128>}, {transform_indices = @transform_3, window_bounds = array<i64: 8, 128>}, {pipeline_mode = #tpu.pipeline_mode<synchronous>, transform_indices = @transform_4, window_bounds = array<i64: 32, 32>}, {pipeline_mode = #tpu.pipeline_mode<synchronous>, transform_indices = @transform_5, window_bounds = array<i64: 1, 32>}, {transform_indices = @transform_6, window_bounds = array<i64: 8, 128>}]} {
    %c0 = arith.constant 0 : index
    %c0_0 = arith.constant 0 : index
    %0 = vector.load %arg1[%c0, %c0_0] : memref<8x32xf32, #tpu.memory_space<vmem>>, vector<8x32xf32>
    %c0_1 = arith.constant 0 : index
    %c0_2 = arith.constant 0 : index
    %1 = vector.load %arg5[%c0_1, %c0_2] : memref<32x32xf32, #tpu.memory_space<vmem>>, vector<32x32xf32>
    %cst = arith.constant dense<0.000000e+00> : vector<8x32xf32>
    %2 = tpu.matmul %0, %1, %cst {dimension_numbers = #tpu.dot_dimension_numbers<[1], [0], [0], [1], [0, 0, 1, 1], [], []>} : vector<8x32xf32>, vector<32x32xf32>, vector<8x32xf32> -> vector<8x32xf32>
    %c0_3 = arith.constant 0 : index
    %c0_4 = arith.constant 0 : index
    %3 = vector.load %arg6[%c0_3, %c0_4] : memref<1x32xf32, #tpu.memory_space<vmem>>, vector<1x32xf32>
    %4 = vector.broadcast %3 : vector<1x32xf32> to vector<8x32xf32>
    %5 = arith.addf %2, %4 : vector<8x32xf32>
    %c0_5 = arith.constant 0 : index
    %c0_6 = arith.constant 0 : index
    %c0_7 = arith.constant 0 : index
    %6 = vector.load %arg3[%c0_5, %c0_6, %c0_7] : memref<8x32x128xf32, #tpu.memory_space<vmem>>, vector<8x32x128xf32>
    %7 = vector.shape_cast %5 : vector<8x32xf32> to vector<8x32x1xf32>
    %8 = vector.broadcast %7 : vector<8x32x1xf32> to vector<8x32x128xf32>
    %9 = arith.mulf %6, %8 : vector<8x32x128xf32>
    %cst_8 = arith.constant dense<0.000000e+00> : vector<8x128xf32>
    %10 = vector.multi_reduction <add>, %9, %cst_8 [1] : vector<8x32x128xf32> to vector<8x128xf32>
    %c0_9 = arith.constant 0 : index
    %c0_10 = arith.constant 0 : index
    %11 = vector.load %arg2[%c0_9, %c0_10] : memref<8x1xf32, #tpu.memory_space<vmem>>, vector<8x1xf32>
    %12 = vector.broadcast %11 : vector<8x1xf32> to vector<8x128xf32>
    %13 = arith.addf %10, %12 : vector<8x128xf32>
    %14 = math.tanh %13 : vector<8x128xf32>
    %cst_11 = arith.constant 1.000000e+01 : f32
    %15 = vector.broadcast %cst_11 : f32 to vector<8x128xf32>
    %16 = arith.mulf %15, %14 : vector<8x128xf32>
    %c0_12 = arith.constant 0 : index
    %c0_13 = arith.constant 0 : index
    %17 = vector.load %arg4[%c0_12, %c0_13] : memref<8x128xi32, #tpu.memory_space<vmem>>, vector<8x128xi32>
    %c1_i32 = arith.constant 1 : i32
    %18 = vector.broadcast %c1_i32 : i32 to vector<8x128xi32>
    %19 = arith.cmpi eq, %17, %18 : vector<8x128xi32>
    %cst_14 = arith.constant -1.000000e+30 : f32
    %20 = vector.broadcast %cst_14 : f32 to vector<8x128xf32>
    %21 = arith.select %19, %20, %16 : vector<8x128xi1>, vector<8x128xf32>
    %cst_15 = arith.constant dense<0xFF800000> : vector<8xf32>
    %22 = vector.multi_reduction <maximumf>, %21, %cst_15 [1] : vector<8x128xf32> to vector<8xf32>
    %23 = vector.shape_cast %22 : vector<8xf32> to vector<8x1xf32>
    %24 = vector.broadcast %23 : vector<8x1xf32> to vector<8x128xf32>
    %25 = arith.subf %21, %24 : vector<8x128xf32>
    %26 = math.exp %25 : vector<8x128xf32>
    %cst_16 = arith.constant dense<0.000000e+00> : vector<8xf32>
    %27 = vector.multi_reduction <add>, %26, %cst_16 [1] : vector<8x128xf32> to vector<8xf32>
    %28 = vector.shape_cast %27 : vector<8xf32> to vector<8x1xf32>
    %cst_17 = arith.constant 1.000000e+00 : f32
    %29 = vector.broadcast %cst_17 : f32 to vector<8x1xf32>
    %30 = arith.divf %29, %28 : vector<8x1xf32>
    %31 = vector.broadcast %30 : vector<8x1xf32> to vector<8x128xf32>
    %32 = arith.mulf %26, %31 : vector<8x128xf32>
    %c0_18 = arith.constant 0 : index
    %c0_19 = arith.constant 0 : index
    %33 = vector.load %arg7[%c0_18, %c0_19] : memref<8x128xf32, #tpu.memory_space<vmem>>, vector<8x128xf32>
    tpu.vector_store %arg7[%c0_18, %c0_19], %32 {strides = array<i32>} : memref<8x128xf32, #tpu.memory_space<vmem>>, vector<8x128xf32>,
    return
  }
  func.func @transform_0(%arg0: i32) -> (i32, i32) {
    %c0_i32 = arith.constant 0 : i32
    %c0_i32_0 = arith.constant 0 : i32
    return %arg0, %c0_i32 : i32, i32
  }
  func.func @transform_1(%arg0: i32) -> (i32, i32) {
    %c0_i32 = arith.constant 0 : i32
    %c0_i32_0 = arith.constant 0 : i32
    return %arg0, %c0_i32 : i32, i32
  }
  func.func @transform_2(%arg0: i32) -> (i32, i32, i32) {
    %c0_i32 = arith.constant 0 : i32
    %c0_i32_0 = arith.constant 0 : i32
    %c0_i32_1 = arith.constant 0 : i32
    return %arg0, %c0_i32, %c0_i32_0 : i32, i32, i32
  }
  func.func @transform_3(%arg0: i32) -> (i32, i32) {
    %c0_i32 = arith.constant 0 : i32
    %c0_i32_0 = arith.constant 0 : i32
    return %arg0, %c0_i32 : i32, i32
  }
  func.func @transform_4(%arg0: i32) -> (i32, i32) {
    %c0_i32 = arith.constant 0 : i32
    %c0_i32_0 = arith.constant 0 : i32
    %c0_i32_1 = arith.constant 0 : i32
    return %c0_i32, %c0_i32_0 : i32, i32
  }
  func.func @transform_5(%arg0: i32) -> (i32, i32) {
    %c0_i32 = arith.constant 0 : i32
    %c0_i32_0 = arith.constant 0 : i32
    %c0_i32_1 = arith.constant 0 : i32
    return %c0_i32, %c0_i32_0 : i32, i32
  }
  func.func @transform_6(%arg0: i32) -> (i32, i32) {
    %c0_i32 = arith.constant 0 : i32
    %c0_i32_0 = arith.constant 0 : i32
    return %arg0, %c0_i32 : i32, i32
  }
}

</mosaic_0001>

<bundles_post_ra>
// kernel: tpu_custom_call.1
= control target key start
LH: loop header
LB: loop body
LE: loop exit
PB: predicated region body
PF: predicated region fallthrough
CT: control target
= control target key end

     0   :  { %11 = vsyncpa [#allocation3], 0  ;;  %s757_s0 = inlined_call_operand.vmem [shape: f32[8,32], index: 0, kind: input, shape index: {}]   ;;  %s758_s1 = inlined_call_operand.vmem [shape: f32[8,1], index: 1, kind: input, shape index: {}]   ;;  %s759_s2 = inlined_call_operand.hbm [shape: f32[8,32,128], index: 2, kind: input, shape index: {}]   ;;  %s760_s3 = inlined_call_operand.vmem [shape: s32[8,128], index: 3, kind: input, shape index: {}]   ;;  %s761_s4 = inlined_call_operand.hbm [shape: f32[32,32], index: 4, kind: input, shape index: {}]   ;;  %s762_s5 = inlined_call_operand.vmem [shape: f32[1,32], index: 5, kind: input, shape index: {}]   ;;  %s763_s6 = inlined_call_operand.hbm [shape: f32[8,128], index: 6, kind: output, shape index: {}]  }
   0x1   :  { %12 = vsyncpa [#allocation6], 0 }
   0x2   :  { %13 = vsyncpa [#allocation4], 0  ;;  %s656_s21 = smov [#allocation2]   ;;  %s584_s25 = scalar_lea.hbm %s759_s2, 4096 }
   0x3   :  { %s23_s22 = sshll.u32 %s656_s21, 4  ;;  %p585_p0 = scmp.ne.s32.totalorder %s759_s2, %s584_s25  ;;  %s24_s22 = int_to_ptr.vmem [resolvable:$true] %s23_s22 }
   0x4   :  { %p588_p1 = scmp.lt.u32.totalorder %s584_s25, %s759_s2 }
   0x6   :  { %p590_p2 = pnand %p588_p1, %p585_p0 }
   0x8   :  { %593 = shalt.err (!%p590_p2)
}
   0x9   :  { %s594_s30 = scalar_lea.vmem %s24_s22, 4096  ;;  %p599_p4 = scmp.lt.s32.totalorder %s24_s22, %s24_s22 }
   0xa   :  { %p595_p3 = scmp.ne.s32.totalorder %s24_s22, %s594_s30  ;;  %p600_p5 = scmp.lt.s32.totalorder %s594_s30, %s594_s30 }
   0xc   :  { %p601_p6 = por %p600_p5, %p599_p4 }
   0xe   :  { %p602_p7 = pnand %p601_p6, %p595_p3 }
  0x10   :  { %605 = shalt.err (!%p602_p7)
}
  0x11   :  { %s657_s7 = smov 128   ;;  %s658_s8 = smov 8  }
  0x12   :  { %29 = dma.hbm_to_vmem [thread:$0]  %s759_s2, 4096, %s24_s22, [#allocation3], %s657_s7, %s657_s7, %s658_s8  }
  0x13   :  { %s659_s11 = smov [#allocation5]   ;;  %s606_s15 = scalar_lea.hbm %s761_s4, 512 }
  0x14   :  { %s37_s12 = sshll.u32 %s659_s11, 4  ;;  %p607_p8 = scmp.ne.s32.totalorder %s761_s4, %s606_s15  ;;  %s38_s12 = int_to_ptr.vmem [resolvable:$true] %s37_s12 }
  0x15   :  { %p610_p9 = scmp.lt.u32.totalorder %s606_s15, %s761_s4 }
  0x17   :  { %p612_p10 = pnand %p610_p9, %p607_p8 }
  0x19   :  { %615 = shalt.err (!%p612_p10)
}
  0x1a   :  { %s616_s20 = scalar_lea.vmem %s38_s12, 512  ;;  %p621_p12 = scmp.lt.s32.totalorder %s38_s12, %s38_s12 }
  0x1b   :  { %p617_p11 = scmp.ne.s32.totalorder %s38_s12, %s616_s20  ;;  %p622_p13 = scmp.lt.s32.totalorder %s616_s20, %s616_s20 }
  0x1d   :  { %p623_p0 = por %p622_p13, %p621_p12 }
  0x1f   :  { %p624_p1 = pnand %p623_p0, %p617_p11 }
  0x21   :  { %627 = shalt.err (!%p624_p1)
}
  0x22   :  { %43 = dma.hbm_to_vmem [thread:$0]  %s761_s4, 512, %s38_s12, [#allocation6], %s657_s7, %s657_s7, %s658_s8  }
  0x23   :  { %650 = dma.done.wait [#allocation3], 4096  }
  0x24   :  { %651 = vsyncadd [#allocation3], 4294963200 }
  0x25   :  { %652 = dma.done.wait [#allocation6], 512  }
  0x26   :  { %653 = vsyncadd [#allocation6], 4294966784  ;;  %v660_v0 = vmov 0.0|0.0   ;;  %vm661_vm0 = vmmov 0   ;;  %v662_v1 = vmov 0.0   ;;  %v53_v2 = vld [vmem:[#allocation5] sm:$0xff]  ;;  %v170_v10 = vlaneseq }
  0x27   :  { %548 = vmatprep.subr.bf16.mxu0 %v660_v0  ;;  %545 = vmatprep.mubr.msk.f32.mxu0 %vm661_vm0, %v662_v1  ;;  %v54_v3 = vld [vmem:[#allocation5 + $0x8] sm:$0xff]  ;;  %v55_v4 = vld [vmem:[#allocation5 + $0x10] sm:$0xff]  ;;  %v56_v6 = vld [vmem:[#allocation5 + $0x18] sm:$0xff]  ;;  %vm64_vm1 = vcmask 261120   ;;  %v663_v9 = vmov 0   ;;  %vm481_vm2 = vcmask 1041409  }
  0x28   :  { %v549_v5 = vpack.c.bf16 %v54_v3, %v53_v2  ;;  %v552_v7 = vpack.c.bf16 %v56_v6, %v55_v4  ;;  %v52_v8 = vld [vmem:[%s757_s0] sm:$0xff]  ;;  %563 = vset.pattern.permute.xlu0 %v663_v9  ;;  %v171_v11 = vshrl.u32 %v170_v10, 7  ;;  %v147_v53 = vld [vmem:[#allocation2 + $0x48] sm:$0xff]  ;;  %v144_v63 = vld [vmem:[#allocation2 + $0x30] sm:$0xff]  ;;  %vm484_vm3 = vcmask 1042434  }
  0x29   :  { %v530_v12 = vld [vmem:[%s762_s5] ss:$0 sm:$0xff]  ;;  %v143_v54 = vld [vmem:[#allocation2 + $0x28] sm:$0xff]  ;;  %v148_v2 = vld [vmem:[#allocation2 + $0x50] sm:$0xff]  ;;  %vm487_vm4 = vcmask 1043459   ;;  %vm490_vm5 = vcmask 1044484  }
  0x2a   :  { %550 = vmatpush3.bf16.msra.mxu0 %v549_v5  ;;  %v210_v13 = vsub.s32 2, %v171_v11  ;;  %v191_v14 = vsub.s32 1, %v171_v11  ;;  %v172_v20 = vsub.s32 0, %v171_v11  ;;  %v229_v22 = vsub.s32 3, %v171_v11  ;;  %v426_v32 = vld [vmem:[%s758_s1] sm:$0xff]  ;;  %v139_v57 = vld [vmem:[#allocation2 + $0x8] sm:$0xff] }
  0x2b   :  { %551 = vmatprep.subr.bf16.mxu0 %v660_v0  ;;  %v248_v24 = vsub.s32 4, %v171_v11  ;;  %v267_v26 = vsub.s32 5, %v171_v11  ;;  %v286_v28 = vsub.s32 6, %v171_v11  ;;  %v305_v30 = vsub.s32 7, %v171_v11  ;;  %v146_v55 = vld [vmem:[#allocation2 + $0x40] sm:$0xff]  ;;  %v151_v0 = vld [vmem:[#allocation2 + $0x68] sm:$0xff] }
  0x2c   :  { %v142_v56 = vld [vmem:[#allocation2 + $0x20] sm:$0xff]  ;;  %v152_v9 = vld [vmem:[#allocation2 + $0x70] sm:$0xff]  ;;  %vm493_vm6 = vcmask 1045509   ;;  %vm496_vm7 = vcmask 1046534   ;;  %vm499_vm8 = vcmask 1047559  }
  0x2d   :  { %v138_v58 = vld [vmem:[#allocation2] sm:$0xff] }
  0x2e   :  { %553 = vmatpush3.bf16.msra.mxu0 %v552_v7  ;;  %v150_v1 = vld [vmem:[#allocation2 + $0x60] sm:$0xff]  ;;  %v145_v7 = vld [vmem:[#allocation2 + $0x38] sm:$0xff] }
  0x31   :  { %546 = vmatmul.mubr.msk.f32.vlgmr.msra.gmra.mrb[0].mxu0 %vm64_vm1, %v52_v8  ;;  %v140_v8 = vld [vmem:[#allocation2 + $0x10] sm:$0xff] }
 0x104   :  { %v134_v15 = vpop.f32.mrb[0].mxu0 }
 0x105   :  { %v135_v16 = vadd.f32 %v530_v12, %v134_v15  ;;  %v547_v17 = vpop.f32.mrb[1].mxu0  ;;  %v155_v12 = vld [vmem:[#allocation2 + $0x88] sm:$0xff] }
 0x107   :  { %v211_v18 = vrot.slane %v135_v16, %v210_v13  ;;  %v192_v19 = vrot.slane %v135_v16, %v191_v14  ;;  %v173_v21 = vrot.slane %v135_v16, %v172_v20  ;;  %v230_v23 = vrot.slane %v135_v16, %v229_v22  ;;  %v154_v13 = vld [vmem:[#allocation2 + $0x80] sm:$0xff]  ;;  %v149_v14 = vld [vmem:[#allocation2 + $0x58] sm:$0xff] }
 0x108   :  { %v249_v25 = vrot.slane %v135_v16, %v248_v24  ;;  %v268_v27 = vrot.slane %v135_v16, %v267_v26  ;;  %v287_v29 = vrot.slane %v135_v16, %v286_v28  ;;  %v306_v31 = vrot.slane %v135_v16, %v305_v30  ;;  %v141_v20 = vld [vmem:[#allocation2 + $0x18] sm:$0xff]  ;;  %v156_v26 = vld [vmem:[#allocation2 + $0x90] sm:$0xff] }
 0x109   :  { %213 = vbcast.lane.b32.xlu1 %v211_v18, 256  ;;  %194 = vbcast.lane.b32.xlu0 %v192_v19, 256 }
 0x10d   :  { %217 = vbcast.lane.b32.xlu1 %v211_v18, 264  ;;  %198 = vbcast.lane.b32.xlu0 %v192_v19, 264 }
 0x111   :  { %179 = vbcast.lane.b32.xlu1 %v173_v21, 264  ;;  %175 = vbcast.lane.b32.xlu0 %v173_v21, 256 }
 0x115   :  { %232 = vbcast.lane.b32.xlu1 %v230_v23, 256  ;;  %202 = vbcast.lane.b32.xlu0 %v192_v19, 272 }
 0x119   :  { %221 = vbcast.lane.b32.xlu1 %v211_v18, 272  ;;  %236 = vbcast.lane.b32.xlu0 %v230_v23, 264 }
 0x11d   :  { %255 = vbcast.lane.b32.xlu1 %v249_v25, 264  ;;  %251 = vbcast.lane.b32.xlu0 %v249_v25, 256 }
 0x121   :  { %206 = vbcast.lane.b32.xlu1 %v192_v19, 280  ;;  %183 = vbcast.lane.b32.xlu0 %v173_v21, 272 }
 0x125   :  { %270 = vbcast.lane.b32.xlu1 %v268_v27, 256  ;;  %240 = vbcast.lane.b32.xlu0 %v230_v23, 272 }
 0x129   :  { %225 = vbcast.lane.b32.xlu1 %v211_v18, 280  ;;  %274 = vbcast.lane.b32.xlu0 %v268_v27, 264 }
 0x12d   :  { %289 = vbcast.lane.b32.xlu1 %v287_v29, 256  ;;  %259 = vbcast.lane.b32.xlu0 %v249_v25, 272 }
 0x131   :  { %187 = vbcast.lane.b32.xlu1 %v173_v21, 280  ;;  %293 = vbcast.lane.b32.xlu0 %v287_v29, 264  ;;  %v153_v21 = vld [vmem:[#allocation2 + $0x78] sm:$0xff] }
 0x135   :  { %278 = vbcast.lane.b32.xlu1 %v268_v27, 272  ;;  %244 = vbcast.lane.b32.xlu0 %v230_v23, 280 }
 0x139   :  { %312 = vbcast.lane.b32.xlu1 %v306_v31, 264  ;;  %308 = vbcast.lane.b32.xlu0 %v306_v31, 256 }
 0x13d   :  { %297 = vbcast.lane.b32.xlu1 %v287_v29, 272  ;;  %263 = vbcast.lane.b32.xlu0 %v249_v25, 280 }
 0x141   :  { %316 = vbcast.lane.b32.xlu1 %v306_v31, 272  ;;  %282 = vbcast.lane.b32.xlu0 %v268_v27, 280 }
 0x145   :  { %320 = vbcast.lane.b32.xlu1 %v306_v31, 280  ;;  %301 = vbcast.lane.b32.xlu0 %v287_v29, 280  ;;  %v159_v31 = vld [vmem:[#allocation2 + $0xa8] sm:$0xff] }
 0x149   :  { %429 = vperm.xlu0 %563, %v426_v32  }
 0x17b   :  { %v214_v33 = vpop.permute.xlu1 %213  ;;  %v195_v34 = vpop.permute.xlu0 %194 }
 0x17c   :  { %v330_v3 = vmul.f32 %v214_v33, %v146_v55  ;;  %v326_v4 = vmul.f32 %v195_v34, %v142_v56 }
 0x17f   :  { %v218_v35 = vpop.permute.xlu1 %217  ;;  %v199_v36 = vpop.permute.xlu0 %198 }
 0x180   :  { %v331_v61 = vmul.f32 %v218_v35, %v147_v53  ;;  %v327_v62 = vmul.f32 %v199_v36, %v143_v54  ;;  %v157_v53 = vld [vmem:[#allocation2 + $0x98] sm:$0xff] }
 0x182   :  { %v372_v17 = vadd.f32 %v331_v61, %v330_v3  ;;  %v363_v18 = vadd.f32 %v327_v62, %v326_v4  ;;  %v162_v62 = vld [vmem:[#allocation2 + $0xc0] sm:$0xff]  ;;  %v168_v4 = vld [vmem:[#allocation2 + $0xf0] sm:$0xff] }
 0x183   :  { %v180_v37 = vpop.permute.xlu1 %179  ;;  %v176_v38 = vpop.permute.xlu0 %175 }
 0x184   :  { %v323_v5 = vmul.f32 %v180_v37, %v139_v57  ;;  %v322_v6 = vmul.f32 %v176_v38, %v138_v58  ;;  %v167_v57 = vld [vmem:[#allocation2 + $0xe8] sm:$0xff]  ;;  %v166_v58 = vld [vmem:[#allocation2 + $0xe0] sm:$0xff] }
 0x186   :  { %v354_v27 = vadd.f32 %v323_v5, %v322_v6  ;;  %v161_v5 = vld [vmem:[#allocation2 + $0xb8] sm:$0xff] }
 0x187   :  { %v233_v39 = vpop.permute.xlu1 %232  ;;  %v203_v40 = vpop.permute.xlu0 %202 }
 0x188   :  { %v328_v10 = vmul.f32 %v203_v40, %v144_v63  ;;  %v334_v22 = vmul.f32 %v233_v39, %v150_v1  ;;  %v158_v40 = vld [vmem:[#allocation2 + $0xa0] sm:$0xff] }
 0x18a   :  { %v364_v32 = vadd.f32 %v363_v18, %v328_v10 }
 0x18b   :  { %v222_v41 = vpop.permute.xlu1 %221  ;;  %v237_v42 = vpop.permute.xlu0 %236 }
 0x18c   :  { %v335_v11 = vmul.f32 %v237_v42, %v151_v0  ;;  %v332_v19 = vmul.f32 %v222_v41, %v148_v2  ;;  %v164_v0 = vld [vmem:[#allocation2 + $0xd0] sm:$0xff] }
 0x18e   :  { %v381_v33 = vadd.f32 %v335_v11, %v334_v22  ;;  %v373_v38 = vadd.f32 %v372_v17, %v332_v19 }
 0x18f   :  { %v256_v43 = vpop.permute.xlu1 %255  ;;  %v252_v44 = vpop.permute.xlu0 %251 }
 0x190   :  { %v339_v28 = vmul.f32 %v256_v43, %v155_v12  ;;  %v338_v29 = vmul.f32 %v252_v44, %v154_v13  ;;  %v163_v44 = vld [vmem:[#allocation2 + $0xc8] sm:$0xff] }
 0x192   :  { %v390_v54 = vadd.f32 %v339_v28, %v338_v29 }
 0x193   :  { %v207_v45 = vpop.permute.xlu1 %206  ;;  %v184_v46 = vpop.permute.xlu0 %183 }
 0x194   :  { %v329_v23 = vmul.f32 %v207_v45, %v145_v7  ;;  %v324_v24 = vmul.f32 %v184_v46, %v140_v8 }
 0x196   :  { %v365_v42 = vadd.f32 %v364_v32, %v329_v23  ;;  %v355_v39 = vadd.f32 %v354_v27, %v324_v24 }
 0x197   :  { %v733_v47 = vpop.permute.xlu1 %270  ;;  %v241_v48 = vpop.permute.xlu0 %240 }
 0x198   :  { %v336_v25 = vmul.f32 %v241_v48, %v152_v9  ;;  %v160_v48 = vld [vmem:[#allocation2 + $0xb0] sm:$0xff]  ;;  %v366_v2 = vrot.slane %v365_v42, 4 }
 0x19a   :  { %v382_v45 = vadd.f32 %v381_v33, %v336_v25 }
 0x19b   :  { %v226_v49 = vpop.permute.xlu1 %225  ;;  %v275_v50 = vpop.permute.xlu0 %274 }
 0x19c   :  { %v333_v30 = vmul.f32 %v226_v49, %v149_v14  ;;  %v343_v46 = vmul.f32 %v275_v50, %v159_v31  ;;  %v342_v49 = vmul.f32 %v733_v47, %v158_v40 }
 0x19e   :  { %v374_v43 = vadd.f32 %v373_v38, %v333_v30  ;;  %v399_v50 = vadd.f32 %v343_v46, %v342_v49 }
 0x19f   :  { %v735_v51 = vpop.permute.xlu1 %289  ;;  %v260_v52 = vpop.permute.xlu0 %259 }
 0x1a0   :  { %v340_v41 = vmul.f32 %v260_v52, %v156_v26  ;;  %v375_v6 = vrot.slane %v374_v43, 4  ;;  %v346_v9 = vmul.f32 %v735_v51, %v162_v62 }
 0x1a2   :  { %v391_v63 = vadd.f32 %v390_v54, %v340_v41  ;;  %v376_v22 = vadd.f32 %v375_v6, %v374_v43 }
 0x1a3   :  { %v188_v59 = vpop.permute.xlu1 %187  ;;  %v737_v60 = vpop.permute.xlu0 %293 }
 0x1a4   :  { %v325_v34 = vmul.f32 %v188_v59, %v141_v20  ;;  %v347_v3 = vmul.f32 %v737_v60, %v163_v44  ;;  %v169_v20 = vld [vmem:[#allocation2 + $0xf8] sm:$0xff]  ;;  %v377_v38 = vrot.slane %v376_v22, 2 }
 0x1a5   :  { %v165_v60 = vld [vmem:[#allocation2 + $0xd8] sm:$0xff] }
 0x1a6   :  { %v356_v55 = vadd.f32 %v355_v39, %v325_v34  ;;  %v408_v19 = vadd.f32 %v347_v3, %v346_v9  ;;  %v378_v43 = vadd.f32 %v377_v38, %v376_v22 }
 0x1a7   :  { %v279_v15 = vpop.permute.xlu1 %278  ;;  %v245_v16 = vpop.permute.xlu0 %244 }
 0x1a8   :  { %v337_v35 = vmul.f32 %v245_v16, %v153_v21  ;;  %v344_v52 = vmul.f32 %v279_v15, %v160_v48  ;;  %v357_v10 = vrot.slane %v356_v55, 4  ;;  %v367_v21 = vadd.f32 %v366_v2, %v365_v42 }
 0x1aa   :  { %v383_v56 = vadd.f32 %v382_v45, %v337_v35  ;;  %v400_v15 = vadd.f32 %v399_v50, %v344_v52  ;;  %v358_v25 = vadd.f32 %v357_v10, %v356_v55 }
 0x1ab   :  { %v313_v36 = vpop.permute.xlu1 %312  ;;  %v309_v37 = vpop.permute.xlu0 %308 }
 0x1ac   :  { %v351_v7 = vmul.f32 %v313_v36, %v167_v57  ;;  %v350_v47 = vmul.f32 %v309_v37, %v166_v58  ;;  %v384_v11 = vrot.slane %v383_v56, 4  ;;  %v368_v37 = vrot.slane %v367_v21, 2 }
 0x1ad   :  { %v359_v40 = vrot.slane %v358_v25, 2 }
 0x1ae   :  { %v417_v23 = vadd.f32 %v351_v7, %v350_v47  ;;  %v385_v26 = vadd.f32 %v384_v11, %v383_v56  ;;  %v369_v54 = vadd.f32 %v368_v37, %v367_v21 }
 0x1af   :  { %v298_v59 = vpop.permute.xlu1 %297  ;;  %v264_v61 = vpop.permute.xlu0 %263  ;;  %v360_v44 = vadd.f32 %v359_v40, %v358_v25 }
 0x1b0   :  { %v341_v1 = vmul.f32 %v264_v61, %v157_v53  ;;  %v348_v12 = vmul.f32 %v298_v59, %v164_v0  ;;  %v386_v41 = vrot.slane %v385_v26, 2  ;;  %v370_v59 = vrot.slane %v369_v54, 1 }
 0x1b1   :  { %v379_v61 = vrot.slane %v378_v43, 1  ;;  %v361_v62 = vrot.slane %v360_v44, 1 }
 0x1b2   :  { %v392_v8 = vadd.f32 %v391_v63, %v341_v1  ;;  %v409_v27 = vadd.f32 %v408_v19, %v348_v12  ;;  %v387_v49 = vadd.f32 %v386_v41, %v385_v26  ;;  %v371_v50 = vadd.f32 %v370_v59, %v369_v54 }
 0x1b3   :  { %v317_v13 = vpop.permute.xlu1 %316  ;;  %v283_v14 = vpop.permute.xlu0 %282  ;;  %v380_v3 = vadd.f32 %v379_v61, %v378_v43 }
 0x1b4   :  { %v393_v16 = vrot.slane %v392_v8, 4  ;;  %v352_v17 = vmul.f32 %v317_v13, %v168_v4  ;;  %v345_v18 = vmul.f32 %v283_v14, %v161_v5  ;;  %v388_v63 = vrot.slane %v387_v49, 1 }
 0x1b5   :  { %v362_v4 = vadd.f32 %v361_v62, %v360_v44 }
 0x1b6   :  { %v401_v24 = vadd.f32 %v400_v15, %v345_v18  ;;  %v394_v51 = vadd.f32 %v393_v16, %v392_v8  ;;  %v418_v30 = vadd.f32 %v417_v23, %v352_v17  ;;  %v389_v5 = vadd.f32 %v388_v63, %v387_v49 }
 0x1b7   :  { %v321_v28 = vpop.permute.xlu1 %320  ;;  %v302_v29 = vpop.permute.xlu0 %301 }
 0x1b8   :  { %v402_v31 = vrot.slane %v401_v24, 4  ;;  %v353_v32 = vmul.f32 %v321_v28, %v169_v20  ;;  %v349_v33 = vmul.f32 %v302_v29, %v165_v60  ;;  %v395_v42 = vrot.slane %v394_v51, 2 }
 0x1ba   :  { %v403_v34 = vadd.f32 %v402_v31, %v401_v24  ;;  %v419_v35 = vadd.f32 %v418_v30, %v353_v32  ;;  %v410_v36 = vadd.f32 %v409_v27, %v349_v33  ;;  %v396_v55 = vadd.f32 %v395_v42, %v394_v51 }
 0x1bc   :  { %v420_v39 = vrot.slane %v419_v35, 4  ;;  %v411_v45 = vrot.slane %v410_v36, 4  ;;  %v404_v46 = vrot.slane %v403_v34, 2  ;;  %v397_v52 = vrot.slane %v396_v55, 1 }
 0x1be   :  { %v421_v48 = vadd.f32 %v420_v39, %v419_v35  ;;  %v412_v53 = vadd.f32 %v411_v45, %v410_v36  ;;  %v405_v58 = vadd.f32 %v404_v46, %v403_v34  ;;  %v398_v6 = vadd.f32 %v397_v52, %v396_v55  ;;  %v470_v46 = vld [vmem:[%s760_s3] sm:$0xff]  ;;  %s664_s3 = smov [#allocation7]  }
 0x1bf   :  { %vm471_vm9 = vcmp.eq.s32.totalorder %v470_v46, 1  ;;  %s520_s26 = sshll.u32 %s664_s3, 4  ;;  %s521_s26 = int_to_ptr.vmem [resolvable:$true] %s520_s26 }
 0x1c0   :  { %v422_v56 = vrot.slane %v421_v48, 2  ;;  %v413_v57 = vrot.slane %v412_v53, 2  ;;  %v406_v2 = vrot.slane %v405_v58, 1  ;;  %s628_s27 = scalar_lea.vmem %s521_s26, 128  ;;  %p633_p3 = scmp.lt.s32.totalorder %s521_s26, %s521_s26 }
 0x1c1   :  { %p629_p2 = scmp.ne.s32.totalorder %s521_s26, %s628_s27  ;;  %p634_p4 = scmp.lt.s32.totalorder %s628_s27, %s628_s27 }
 0x1c2   :  { %v423_v0 = vadd.f32 %v422_v56, %v421_v48  ;;  %v414_v1 = vadd.f32 %v413_v57, %v412_v53  ;;  %v407_v13 = vadd.f32 %v406_v2, %v405_v58 }
 0x1c3   :  { %p635_p5 = por %p634_p4, %p633_p3 }
 0x1c4   :  { %v424_v7 = vrot.slane %v423_v0, 1  ;;  %v415_v47 = vrot.slane %v414_v1, 1 }
 0x1c5   :  { %p636_p6 = pnand %p635_p5, %p629_p2 }
 0x1c6   :  { %v416_v60 = vadd.f32 %v415_v47, %v414_v1  ;;  %v425_v22 = vadd.f32 %v424_v7, %v423_v0 }
 0x1c8   :  { %v430_v8 = vpop.permute.xlu0 %429 }
 0x1c9   :  { %v431_v9 = vrot.slane %v430_v8, 1  ;;  %v432_v10 = vrot.slane %v430_v8, 2  ;;  %v433_v11 = vrot.slane %v430_v8, 3  ;;  %v446_v12 = vadd.f32 %v430_v8, %v362_v4 }
 0x1ca   :  { %v434_v14 = vrot.slane %v430_v8, 4  ;;  %v435_v15 = vrot.slane %v430_v8, 5  ;;  %v436_v16 = vrot.slane %v430_v8, 6  ;;  %v437_v18 = vrot.slane %v430_v8, 7 }
 0x1cb   :  { %v447_v17 = vadd.f32 %v431_v9, %v371_v50  ;;  %v448_v19 = vadd.f32 %v432_v10, %v380_v3  ;;  %v449_v20 = vadd.f32 %v433_v11, %v389_v5  ;;  %564 = vtanh.f32 %v446_v12 }
 0x1cc   :  { %v450_v21 = vadd.f32 %v434_v14, %v398_v6  ;;  %v451_v23 = vadd.f32 %v435_v15, %v407_v13  ;;  %v452_v24 = vadd.f32 %v436_v16, %v416_v60  ;;  %v453_v25 = vadd.f32 %v437_v18, %v425_v22 }
 0x1cd   :  { %566 = vtanh.f32 %v447_v17 }
 0x1ce   :  { %568 = vtanh.f32 %v448_v19 }
 0x1cf   :  { %570 = vtanh.f32 %v449_v20 }
 0x1d0   :  { %572 = vtanh.f32 %v450_v21 }
 0x1d1   :  { %574 = vtanh.f32 %v451_v23 }
 0x1d2   :  { %576 = vtanh.f32 %v452_v24 }
 0x1d3   :  { %578 = vtanh.f32 %v453_v25 }
 0x1d5   :  { %v565_v26 = vpop.eup %564 }
 0x1d6   :  { %v462_v32 = vmul.f32 10.0, %v565_v26 }
 0x1d7   :  { %v567_v27 = vpop.eup %566 }
 0x1d8   :  { %v569_v51 = vpop.eup %568  ;;  %v463_v28 = vmul.f32 10.0, %v567_v27 }
 0x1d9   :  { %v571_v29 = vpop.eup %570  ;;  %v464_v30 = vmul.f32 10.0, %v569_v51 }
 0x1da   :  { %v573_v31 = vpop.eup %572  ;;  %v465_v33 = vmul.f32 10.0, %v571_v29  ;;  %v480_v34 = vrot.slane %v463_v28, 7 }
 0x1db   :  { %v575_v35 = vpop.eup %574  ;;  %v466_v36 = vmul.f32 10.0, %v573_v31  ;;  %v483_v37 = vrot.slane %v464_v30, 6 }
 0x1dc   :  { %v577_v38 = vpop.eup %576  ;;  %v467_v40 = vmul.f32 10.0, %v575_v35  ;;  %v482_v41 = vsel %vm481_vm2, %v480_v34, %v462_v32  ;;  %v486_v42 = vrot.slane %v465_v33, 5 }
 0x1dd   :  { %v579_v39 = vpop.eup %578  ;;  %v468_v45 = vmul.f32 10.0, %v577_v38  ;;  %v485_v48 = vsel %vm484_vm3, %v483_v37, %v482_v41  ;;  %v489_v53 = vrot.slane %v466_v36, 4 }
 0x1de   :  { %v469_v54 = vmul.f32 10.0, %v579_v39  ;;  %v488_v43 = vsel %vm487_vm4, %v486_v42, %v485_v48  ;;  %v492_v44 = vrot.slane %v467_v40, 3 }
 0x1df   :  { %v491_v49 = vsel %vm490_vm5, %v489_v53, %v488_v43  ;;  %v495_v55 = vrot.slane %v468_v45, 2 }
 0x1e0   :  { %v494_v56 = vsel %vm493_vm6, %v492_v44, %v491_v49  ;;  %v498_v57 = vrot.slane %v469_v54, 1 }
 0x1e1   :  { %v497_v58 = vsel %vm496_vm7, %v495_v55, %v494_v56 }
 0x1e2   :  { %v500_v59 = vsel %vm499_vm8, %v498_v57, %v497_v58 }
 0x1e3   :  { %v502_v61 = vsel %vm471_vm9, -1e+30, %v500_v59 }
 0x1e4   :  { %503 = vmax.xlane.f32.xlu1 %v502_v61 }
 0x271   :  { %v504_v62 = vpop.xlane.xlu1 %503 }
 0x272   :  { %v505_v63 = vsub.f32 %v502_v61, %v504_v62 }
 0x274   :  { %v506_v52 = vmul.f32 1.442695, %v505_v63 }
 0x276   :  { %580 = vpow2.f32 %v506_v52 }
 0x280   :  { %v581_v0 = vpop.eup %580 }
 0x281   :  { %508 = vadd.xlane.f32.xlu0 %v581_v0 }
 0x30e   :  { %v509_v1 = vpop.xlane.xlu0 %508 }
 0x30f   :  { %582 = vrcp.f32 %v509_v1 }
 0x319   :  { %v583_v2 = vpop.eup %582 }
 0x31a   :  { %v512_v50 = vmul.f32 %v583_v2, %v581_v0 }
 0x31c   :  { %513 = vst [vmem:[#allocation7] sm:$0xff] %v512_v50 }
 0x31d   :  { %639 = shalt.err (!%p636_p6)
}
 0x31e   :  { %s640_s30 = scalar_lea.hbm %s763_s6, 128 }
 0x31f   :  { %p641_p7 = scmp.ne.s32.totalorder %s763_s6, %s640_s30  ;;  %p644_p8 = scmp.lt.u32.totalorder %s640_s30, %s763_s6 }
 0x321   :  { %p646_p9 = pnand %p644_p8, %p641_p7 }
 0x323   :  { %649 = shalt.err (!%p646_p9)
}
 0x324   :  { %523 = dma.vmem_to_hbm [thread:$0]  %s521_s26, 128, %s763_s6, [#allocation4]  }
 0x325   :  { %654 = dma.done.wait [#allocation4], 128  }
 0x326   :  { %655 = vsyncadd [#allocation4], 4294967168 }
 0x327   :  { %527 = vsyncpa [#allocation3], 1 }
 0x328   :  { %528 = vsyncpa [#allocation6], 1 }
 0x329   :  { %529 = vsyncpa [#allocation4], 1 }

</bundles_post_ra>
